<compile_context>
chip_gen: v5e
topology: v5e:2x2
jax: 0.10.0
libtpu: 0.0.40
codegen_flags: <defaults>
</compile_context>

<pallas_src>
import functools

import jax
import jax.numpy as jnp
from jax.experimental import pallas as pl
from jax.experimental.pallas import tpu as pltpu

LANES = 128


def _bce_sum_kernel(x_ref, y_ref, out_ref, acc_ref, *, n_elem, tile_rows, steps):
    c = pl.program_id(0)  # core shard (parallel axis)
    i = pl.program_id(1)  # reduction step within the shard

    @pl.when(i == 0)
    def _():
        acc_ref[...] = jnp.zeros_like(acc_ref)

    x = x_ref[...].astype(jnp.float32)
    y = y_ref[...].astype(jnp.float32)

    # Numerically stable BCE-with-logits (same formulation PyTorch uses):
    #   max(x, 0) - x*y + log(1 + exp(-|x|))
    elem = jnp.maximum(x, 0.0) - x * y + jnp.log1p(jnp.exp(-jnp.abs(x)))

    tile_elems = tile_rows * LANES
    start = (c * steps + i) * tile_elems  # global element offset of this tile

    # Lane-parallel accumulation: keep (1, 128) per-lane partials; defer the
    # cross-lane reduce to the final step of the shard.
    @pl.when(start + tile_elems <= n_elem)  # fully-valid tile: no mask work
    def _():
        acc_ref[...] += jnp.sum(elem, axis=0, keepdims=True)

    @pl.when(start + tile_elems > n_elem)  # tile overlaps the padded tail
    def _():
        rid = jax.lax.broadcasted_iota(jnp.int32, (tile_rows, LANES), 0)
        lid = jax.lax.broadcasted_iota(jnp.int32, (tile_rows, LANES), 1)
        eid = start + rid * LANES + lid
        masked = jnp.where(eid < n_elem, elem, 0.0)
        acc_ref[...] += jnp.sum(masked, axis=0, keepdims=True)

    @pl.when(i == pl.num_programs(1) - 1)
    def _():
        out_ref[...] = jnp.zeros_like(out_ref)
        out_ref[0:1, :] = acc_ref[...]


def bce_with_logits_loss(y_pred, y_true, *, tile_rows=1024, num_core_shards=2):
    """Mean BCE-with-logits over all elements (PyTorch default reduction)."""
    assert y_pred.shape == y_true.shape
    n_elem = y_pred.size
    out_dtype = y_pred.dtype

    # Flatten (metadata only for contiguous inputs). Native dtypes go straight
    # into the kernel; the kernel casts to f32 on load.
    x_flat = y_pred.reshape(-1)
    y_flat = y_true.reshape(-1)

    # Sublane granularity driven by the narrowest input dtype
    # (32-bit -> 8 rows, 16-bit -> 16 rows, 8-bit -> 32 rows).
    min_bytes = min(jnp.dtype(x_flat.dtype).itemsize, jnp.dtype(y_flat.dtype).itemsize)
    sub = 8 * max(1, 4 // max(1, min_bytes))

    rows = pl.cdiv(n_elem, LANES)

    # Shard rows across TensorCores only when there is enough work.
    nc = num_core_shards if rows >= num_core_shards * sub else 1

    tr = max(sub, min(tile_rows, pl.cdiv(rows, nc)))
    tr = pl.cdiv(tr, sub) * sub
    steps = pl.cdiv(rows, nc * tr)
    rows_padded = nc * steps * tr

    pad = rows_padded * LANES - n_elem
    if pad:  # common divisible case skips the pad copy entirely
        x_flat = jnp.pad(x_flat, (0, pad))
        y_flat = jnp.pad(y_flat, (0, pad))
    x2 = x_flat.reshape(rows_padded, LANES)
    y2 = y_flat.reshape(rows_padded, LANES)

    kernel = functools.partial(
        _bce_sum_kernel, n_elem=n_elem, tile_rows=tr, steps=steps
    )

    # One lane-dense (8, 128) partial block per core shard; only row 0 is used.
    partials = pl.pallas_call(
        kernel,
        out_shape=jax.ShapeDtypeStruct((nc * 8, LANES), jnp.float32),
        grid_spec=pltpu.PrefetchScalarGridSpec(
            num_scalar_prefetch=0,
            grid=(nc, steps),
            in_specs=[
                pl.BlockSpec((tr, LANES), lambda c, i: (c * steps + i, 0)),
                pl.BlockSpec((tr, LANES), lambda c, i: (c * steps + i, 0)),
            ],
            out_specs=pl.BlockSpec((8, LANES), lambda c, i: (c, 0)),
            scratch_shapes=[pltpu.VMEM((1, LANES), jnp.float32)],
        ),
        compiler_params=pltpu.CompilerParams(
            dimension_semantics=("parallel", "arbitrary"),
        ),
    )(x2, y2)

    # Glue: combine per-core partials, take the mean over the true element
    # count, and return a scalar in y_pred's dtype (PyTorch semantics).
    total = jnp.sum(partials)
    return (total / jnp.float32(n_elem)).astype(out_dtype)


if __name__ == "__main__":
    key = jax.random.PRNGKey(0)
    k1, k2 = jax.random.split(key)

    # Small NCHW shapes consistent with a binary segmentation head.
    B, C, H, W = 2, 4, 16, 16
    y_pred = jax.random.normal(k1, (B, C, H, W), dtype=jnp.float32)
    # binary targets (e.g. an int mask in torch); cast happens inside the kernel
    y_true = (jax.random.uniform(k2, (B, C, H, W)) > 0.5).astype(jnp.int32)

    loss = bce_with_logits_loss(y_pred, y_true)
    jax.block_until_ready(loss)

    # Reference check in plain JAX.
    x = y_pred.astype(jnp.float32)
    y = y_true.astype(jnp.float32)
    ref = jnp.mean(jnp.maximum(x, 0.0) - x * y + jnp.log1p(jnp.exp(-jnp.abs(x))))
    assert jnp.allclose(loss, ref, rtol=1e-5, atol=1e-6), (loss, ref)

    print("KERNEL_OK")
</pallas_src>

<mosaic_0001>
module attributes {stable_mosaic.version = 11 : i64} {
  func.func @_bce_sum_kernel(%arg0: i32, %arg1: i32, %arg2: memref<8x128xf32, #tpu.memory_space<vmem>>, %arg3: memref<8x128xi32, #tpu.memory_space<vmem>>, %arg4: memref<8x128xf32, #tpu.memory_space<vmem>>, %arg5: memref<1x128xf32, #tpu.memory_space<vmem>>) attributes {dimension_semantics = [#tpu.dimension_semantics<parallel>, #tpu.dimension_semantics<arbitrary>], iteration_bounds = array<i64: 2, 1>, scalar_prefetch = 0 : i64, scratch_operands = 1 : i64, tpu.core_type = #tpu.core_type<tc>, window_params = [{transform_indices = @transform_0, window_bounds = array<i64: 8, 128>}, {transform_indices = @transform_1, window_bounds = array<i64: 8, 128>}, {transform_indices = @transform_2, window_bounds = array<i64: 8, 128>}]} {
    %c0_i32 = arith.constant 0 : i32
    %0 = arith.cmpi eq, %arg1, %c0_i32 : i32
    %1 = arith.extui %0 : i1 to i32
    %c0_i32_0 = arith.constant 0 : i32
    %2 = arith.cmpi ne, %1, %c0_i32_0 : i32
    scf.if %2 {
      %cst_12 = arith.constant 0.000000e+00 : f32
      %30 = vector.broadcast %cst_12 : f32 to vector<1x128xf32>
      %c0_13 = arith.constant 0 : index
      %c0_14 = arith.constant 0 : index
      %31 = vector.load %arg5[%c0_13, %c0_14] : memref<1x128xf32, #tpu.memory_space<vmem>>, vector<1x128xf32>
      tpu.vector_store %arg5[%c0_13, %c0_14], %30 {strides = array<i32>} : memref<1x128xf32, #tpu.memory_space<vmem>>, vector<1x128xf32>,
    } else {
    }
    %c0 = arith.constant 0 : index
    %c0_1 = arith.constant 0 : index
    %3 = vector.load %arg2[%c0, %c0_1] : memref<8x128xf32, #tpu.memory_space<vmem>>, vector<8x128xf32>
    %c0_2 = arith.constant 0 : index
    %c0_3 = arith.constant 0 : index
    %4 = vector.load %arg3[%c0_2, %c0_3] : memref<8x128xi32, #tpu.memory_space<vmem>>, vector<8x128xi32>
    %5 = arith.sitofp %4 : vector<8x128xi32> to vector<8x128xf32>
    %cst = arith.constant 0.000000e+00 : f32
    %6 = vector.broadcast %cst : f32 to vector<8x128xf32>
    %7 = arith.maximumf %3, %6 : vector<8x128xf32>
    %8 = arith.mulf %3, %5 : vector<8x128xf32>
    %9 = arith.subf %7, %8 : vector<8x128xf32>
    %10 = math.absf %3 : vector<8x128xf32>
    %cst_4 = arith.constant 0.000000e+00 : f32
    %11 = vector.broadcast %cst_4 : f32 to vector<8x128xf32>
    %12 = arith.subf %11, %10 : vector<8x128xf32>
    %13 = math.exp %12 : vector<8x128xf32>
    %14 = math.log1p %13 : vector<8x128xf32>
    %15 = arith.addf %9, %14 : vector<8x128xf32>
    %c1_i32 = arith.constant 1 : i32
    %16 = arith.muli %arg0, %c1_i32 : i32
    %17 = arith.addi %16, %arg1 : i32
    %c1024_i32 = arith.constant 1024 : i32
    %18 = arith.muli %17, %c1024_i32 : i32
    %c1024_i32_5 = arith.constant 1024 : i32
    %19 = arith.addi %18, %c1024_i32_5 : i32
    %c2048_i32 = arith.constant 2048 : i32
    %20 = arith.cmpi sle, %19, %c2048_i32 : i32
    %21 = arith.extui %20 : i1 to i32
    %c0_i32_6 = arith.constant 0 : i32
    %22 = arith.cmpi ne, %21, %c0_i32_6 : i32
    scf.if %22 {
      %c0_12 = arith.constant 0 : index
      %c0_13 = arith.constant 0 : index
      %30 = vector.load %arg5[%c0_12, %c0_13] : memref<1x128xf32, #tpu.memory_space<vmem>>, vector<1x128xf32>
      %cst_14 = arith.constant dense<0.000000e+00> : vector<128xf32>
      %31 = vector.multi_reduction <add>, %15, %cst_14 [0] : vector<8x128xf32> to vector<128xf32>
      %32 = vector.shape_cast %31 : vector<128xf32> to vector<1x128xf32>
      %33 = arith.addf %30, %32 : vector<1x128xf32>
      %c0_15 = arith.constant 0 : index
      %c0_16 = arith.constant 0 : index
      %34 = vector.load %arg5[%c0_15, %c0_16] : memref<1x128xf32, #tpu.memory_space<vmem>>, vector<1x128xf32>
      tpu.vector_store %arg5[%c0_15, %c0_16], %33 {strides = array<i32>} : memref<1x128xf32, #tpu.memory_space<vmem>>, vector<1x128xf32>,
    } else {
    }
    %c1024_i32_7 = arith.constant 1024 : i32
    %23 = arith.addi %18, %c1024_i32_7 : i32
    %c2048_i32_8 = arith.constant 2048 : i32
    %24 = arith.cmpi sgt, %23, %c2048_i32_8 : i32
    %25 = arith.extui %24 : i1 to i32
    %c0_i32_9 = arith.constant 0 : i32
    %26 = arith.cmpi ne, %25, %c0_i32_9 : i32
    scf.if %26 {
      %30 = tpu.iota {dimensions = array<i32: 0>} : vector<8x128xi32>
      %31 = tpu.iota {dimensions = array<i32: 1>} : vector<8x128xi32>
      %c128_i32 = arith.constant 128 : i32
      %32 = vector.broadcast %c128_i32 : i32 to vector<8x128xi32>
      %33 = arith.muli %30, %32 : vector<8x128xi32>
      %34 = vector.broadcast %18 : i32 to vector<8x128xi32>
      %35 = arith.addi %34, %33 : vector<8x128xi32>
      %36 = arith.addi %35, %31 : vector<8x128xi32>
      %c2048_i32_12 = arith.constant 2048 : i32
      %37 = vector.broadcast %c2048_i32_12 : i32 to vector<8x128xi32>
      %38 = arith.cmpi slt, %36, %37 : vector<8x128xi32>
      %cst_13 = arith.constant 0.000000e+00 : f32
      %39 = vector.broadcast %cst_13 : f32 to vector<8x128xf32>
      %40 = arith.select %38, %15, %39 : vector<8x128xi1>, vector<8x128xf32>
      %c0_14 = arith.constant 0 : index
      %c0_15 = arith.constant 0 : index
      %41 = vector.load %arg5[%c0_14, %c0_15] : memref<1x128xf32, #tpu.memory_space<vmem>>, vector<1x128xf32>
      %cst_16 = arith.constant dense<0.000000e+00> : vector<128xf32>
      %42 = vector.multi_reduction <add>, %40, %cst_16 [0] : vector<8x128xf32> to vector<128xf32>
      %43 = vector.shape_cast %42 : vector<128xf32> to vector<1x128xf32>
      %44 = arith.addf %41, %43 : vector<1x128xf32>
      %c0_17 = arith.constant 0 : index
      %c0_18 = arith.constant 0 : index
      %45 = vector.load %arg5[%c0_17, %c0_18] : memref<1x128xf32, #tpu.memory_space<vmem>>, vector<1x128xf32>
      tpu.vector_store %arg5[%c0_17, %c0_18], %44 {strides = array<i32>} : memref<1x128xf32, #tpu.memory_space<vmem>>, vector<1x128xf32>,
    } else {
    }
    %c0_i32_10 = arith.constant 0 : i32
    %27 = arith.cmpi eq, %arg1, %c0_i32_10 : i32
    %28 = arith.extui %27 : i1 to i32
    %c0_i32_11 = arith.constant 0 : i32
    %29 = arith.cmpi ne, %28, %c0_i32_11 : i32
    scf.if %29 {
      %cst_12 = arith.constant 0.000000e+00 : f32
      %30 = vector.broadcast %cst_12 : f32 to vector<8x128xf32>
      %c0_13 = arith.constant 0 : index
      %c0_14 = arith.constant 0 : index
      %31 = vector.load %arg4[%c0_13, %c0_14] : memref<8x128xf32, #tpu.memory_space<vmem>>, vector<8x128xf32>
      tpu.vector_store %arg4[%c0_13, %c0_14], %30 {strides = array<i32>} : memref<8x128xf32, #tpu.memory_space<vmem>>, vector<8x128xf32>,
      %c0_15 = arith.constant 0 : index
      %c0_16 = arith.constant 0 : index
      %32 = vector.load %arg5[%c0_15, %c0_16] : memref<1x128xf32, #tpu.memory_space<vmem>>, vector<1x128xf32>
      %c0_17 = arith.constant 0 : index
      %c0_18 = arith.constant 0 : index
      %33 = vector.load %arg4[%c0_17, %c0_18] : memref<8x128xf32, #tpu.memory_space<vmem>>, vector<1x128xf32>
      tpu.vector_store %arg4[%c0_17, %c0_18], %32 {strides = array<i32>} : memref<8x128xf32, #tpu.memory_space<vmem>>, vector<1x128xf32>,
    } else {
    }
    return
  }
  func.func @transform_0(%arg0: i32, %arg1: i32) -> (i32, i32) {
    %c1_i32 = arith.constant 1 : i32
    %0 = arith.muli %arg0, %c1_i32 : i32
    %1 = arith.addi %0, %arg1 : i32
    %c0_i32 = arith.constant 0 : i32
    %c0_i32_0 = arith.constant 0 : i32
    return %1, %c0_i32 : i32, i32
  }
  func.func @transform_1(%arg0: i32, %arg1: i32) -> (i32, i32) {
    %c1_i32 = arith.constant 1 : i32
    %0 = arith.muli %arg0, %c1_i32 : i32
    %1 = arith.addi %0, %arg1 : i32
    %c0_i32 = arith.constant 0 : i32
    %c0_i32_0 = arith.constant 0 : i32
    return %1, %c0_i32 : i32, i32
  }
  func.func @transform_2(%arg0: i32, %arg1: i32) -> (i32, i32) {
    %c0_i32 = arith.constant 0 : i32
    %c0_i32_0 = arith.constant 0 : i32
    return %arg0, %c0_i32 : i32, i32
  }
}

</mosaic_0001>

<bundles_post_ra>
// kernel: tpu_custom_call.1
= control target key start
LH: loop header
LB: loop body
LE: loop exit
PB: predicated region body
PF: predicated region fallthrough
CT: control target
= control target key end

     0   :  { %7 = vsyncpa [#allocation4], 0  ;;  %s811_s0 = inlined_call_operand.hbm [shape: f32[16,128], index: 0, kind: input, shape index: {}]   ;;  %s812_s1 = inlined_call_operand.hbm [shape: s32[16,128], index: 1, kind: input, shape index: {}]   ;;  %s813_s2 = inlined_call_operand.hbm [shape: f32[16,128], index: 2, kind: output, shape index: {}]  }
   0x1   :  { %9 = vsyncpa [#allocation4 + $0x1], 0 }
   0x2   :  { %10 = vsyncpa [#allocation7], 0 }
   0x3   :  { %12 = vsyncpa [#allocation7 + $0x1], 0 }
   0x4   :  { %13 = vsyncpa [#allocation5], 0 }
   0x5   :  { %15 = vsyncpa [#allocation5 + $0x1], 0  ;;  %s664_s9 = smov 0   ;;  %s666_s10 = smov 0  }
   0x6   :  { %s668_s11 = smov 0   ;;  %s670_s12 = smov 0  }
   0x7   :  { %s672_s13 = smov 0   ;;  %s674_s14 = smov 0  }
   0x8 LB: > { %s409_s15 = sadd.s32 4294967295, %s646_s14   ;;  %s410_s16 = sadd.s32 4294967294, %s646_s14   ;;  %s646_s14 = sphi %s674_s14, %s21_s14   ;;  %s642_s13 = sphi %s672_s13, %s822_s13   ;;  %s638_s12 = sphi %s670_s12, %s821_s12   ;;  %s634_s11 = sphi %s668_s11, %s820_s11   ;;  %s630_s10 = sphi %s666_s10, %s819_s10   ;;  %s626_s9 = sphi %s664_s9, %s818_s9  }
   0x9   : > { %s33_s17 = sadd.s32 1, %s642_s13  ;;  %s42_s18 = sadd.s32 1, %s634_s11 }
   0xa   : > { %p35_p0 = scmp.ge.s32.totalorder %s33_s17, 2  ;;  %p49_p1 = scmp.ne.s32.totalorder %s634_s11, %s630_s10 }
   0xb   : > { %p50_p2 = scmp.eq.s32.totalorder %s646_s14, 0  ;;  %p55_p3 = scmp.ne.s32.totalorder %s630_s10, %s626_s9 }
   0xc   : > { %s824_s17 = smov (%p35_p0, %s33_s17), 0  ;;  %p56_p5 = scmp.eq.s32.totalorder %s409_s15, 0 }
   0xd   : > { %p705_p4 = por %p50_p2, %p49_p1  ;;  %s39_s20 = ssub.s32 %s642_s13, %s824_s17 }
   0xe   : > { %p107_p6 = scmp.eq.s32.totalorder %s409_s15, 1  ;;  %p40_p7 = scmp.eq.s32.totalorder %s39_s20, 0 }
   0xf   : > { %p711_p8 = por %p56_p5, %p55_p3  ;;  %p113_p10 = scmp.eq.s32.totalorder %s410_s16, 1 }
  0x10   : > { %p715_p9 = por %p107_p6, %p49_p1  ;;  %p412_p12 = scmp.ge.s32.totalorder %s646_s14, 2 }
  0x11   : > { %s720_s23 = scalar_select %p40_p7, %s634_s11, %s42_s18  }
  0x12   : > { %p722_p11 = por %p113_p10, %p55_p3  ;;  %p445_p13 = scmp.lt.s32.totalorder %s646_s14, 2 }
  0x13   : > { %s133_s25 = sand.u32 1, %s634_s11   ;;  %s414_s27 = sshll.u32 %s642_s13, 3 }
  0x14   : > { %s413_s26 = sshll.u32 %s133_s25, 3  ;;  %s142_s30 = scalar_lea.hbm %s811_s0, %s414_s27 }
  0x15   : > { %s137_s3 = scalar_lea.vmem [#allocation3], %s413_s26  ;;  %s144_s5 = sshll.u32 %s142_s30, 4  ;;  %s145_s5 = int_to_ptr.hbm [resolvable:$true] %s144_s5 }
  0x16   : > { %s146_s4 = sshll.u32 %s137_s3, 4  ;;  %p435_p0 = pnand %p445_p13, %p705_p4  ;;  %s147_s4 = int_to_ptr.vmem [resolvable:$true] %s146_s4 }
  0x17   : > { %p417_p1 = scmp.ge.s32.totalorder %s646_s14, 1  ;;  %p171_p2 = scmp.lt.s32.totalorder %s646_s14, 3 }
  0x18   : > { %s134_s6 = scalar_lea.sflag [#allocation4], %s133_s25  ;;  %s162_s15 = scalar_lea.hbm %s812_s1, %s414_s27 }
  0x19   : > { %437 = dma.hbm_to_vmem [thread:$0]  (!%p435_p0), %s145_s5, 128, %s147_s4, %s134_s6  }
  0x1a   : > { %p172_p3 = pnand %p417_p1, %p171_p2  ;;  %s157_s16 = scalar_lea.vmem [#allocation6], %s413_s26 }
  0x1b   : > { %s166_s18 = sshll.u32 %s157_s16, 4  ;;  %s164_s20 = sshll.u32 %s162_s15, 4  ;;  %s167_s18 = int_to_ptr.vmem [resolvable:$true] %s166_s18  ;;  %s165_s20 = int_to_ptr.hbm [resolvable:$true] %s164_s20 }
  0x1c   : > { %s154_s28 = scalar_lea.sflag [#allocation7], %s133_s25  ;;  %175 = sbr.rel (%p172_p3) target bundleno = 128 (0x80), region = 28 }
  0x1d   : > { %440 = dma.hbm_to_vmem [thread:$0]  (!%p435_p0), %s165_s20, 128, %s167_s18, %s154_s28  }
  0x1e   : > { %s741_s19 = sand.u32 (!%p172_p3), 1, %s630_s10  }
  0x1f   : > { %s744_s29 = sshll.u32 (!%p172_p3), %s741_s19, 3  ;;  %s178_s30 = scalar_lea.sflag (!%p172_p3), [#allocation4], %s741_s19 }
  0x20   : > { %s181_s3 = scalar_lea.vmem (!%p172_p3), [#allocation3], %s744_s29 }
  0x21   : > { %613 = dma.done.wait (%p711_p8), %s178_s30, 128  }
  0x22   : > { %615 = vsyncadd (%p711_p8), %s178_s30, 4294967168  ;;  %s188_s25 = scalar_lea.sflag [#allocation7], %s741_s19  ;;  %s191_s26 = scalar_lea.vmem [#allocation6], %s744_s29 }
  0x23   : > { %617 = dma.done.wait (%p711_p8), %s188_s25, 128  }
  0x24   : > { %619 = vsyncadd (%p711_p8), %s188_s25, 4294967168  ;;  %s421_s27 = sshll.u32 %s638_s12, 10  ;;  %v648_v0 = vmov 0.0   ;;  %v225_v1 = vld [vmem:[%s181_s3] sm:$0xff]  ;;  %v226_v5 = vld [vmem:[%s191_s26] sm:$0xff]  ;;  %s764_s21 = scalar_lea.vmem [#allocation8], %s744_s29 }
  0x25   : > { %224 = vst [vmem:[#allocation2] sm:$0x1] %v648_v0  ;;  %s761_s4 = sadd.s32 1024, %s421_s27  ;;  %v231_v2 = vand.u32 2147483647, %v225_v1  ;;  %v227_v7 = vcvt.s32.f32 %v226_v5  ;;  %v228_v11 = vmax.f32 %v225_v1, 0.0 }
  0x26   : > { %p422_p4 = scmp.gt.s32.totalorder %s761_s4, 2048 }
  0x27   : > { %v232_v3 = vsub.f32 0.0, %v231_v2  ;;  %v229_v12 = vmul.f32 %v227_v7, %v225_v1 }
  0x29   : > { %v233_v4 = vmul.f32 1.442695, %v232_v3  ;;  %v230_v16 = vsub.f32 %v228_v11, %v229_v12 }
  0x2b   : > { %496 = vpow2.f32 %v233_v4 }
  0x31   : > { %v497_v6 = vpop.eup %496 }
  0x32   : > { %v235_v8 = vadd.f32 1.0, %v497_v6  ;;  %v238_v9 = vmul.f32 -0.5, %v497_v6  ;;  %v241_v13 = vand.u32 2147483647, %v497_v6 }
  0x34   : > { %498 = vlog2.f32 %v235_v8  ;;  %v239_v10 = vadd.f32 1.0, %v238_v9  ;;  %vm242_vm0 = vcmp.lt.f32.partialorder %v241_v13, 0.0004427343 }
  0x36   : > { %v240_v14 = vmul.f32 %v497_v6, %v239_v10 }
  0x3a   : > { %v499_v15 = vpop.eup %498  ;;  %251 = sbr.rel (%p422_p4) target bundleno = 79 (0x4f), region = 44 }
  0x3b   : > { %v237_v17 = vmul.f32 0.6931472, %v499_v15 }
  0x3d   : > { %v243_v18 = vsel %vm242_vm0, %v240_v14, %v237_v17 }
  0x3e   : > { %v244_v19 = vadd.f32 %v243_v18, %v230_v16 }
  0x3f   : > { %v252_v25 = vld [vmem:[#allocation2] sm:$0x1] }
  0x40   : > { %v253_v20 = vrot.slane %v244_v19, 4 }
  0x42   : > { %v254_v21 = vadd.f32 %v253_v20, %v244_v19 }
  0x44   : > { %v255_v22 = vrot.slane %v254_v21, 2 }
  0x46   : > { %v256_v23 = vadd.f32 %v255_v22, %v254_v21 }
  0x48   : > { %v257_v24 = vrot.slane %v256_v23, 1 }
  0x4a   : > { %v258_v26 = vadd.f32 %v257_v24, %v256_v23 }
  0x4c   : > { %v259_v27 = vadd.f32 %v258_v26, %v252_v25 }
  0x4e   : > { %260 = vst [vmem:[#allocation2] sm:$0x1] %v259_v27 }
  0x4f PF: > { %p423_p5 = scmp.le.s32.totalorder %s761_s4, 2048 }
  0x51   : > { %264 = sbr.rel (%p423_p5) target bundleno = 113 (0x71), region = 48 }
  0x56   : > { %v265_v28 = vlaneseq  ;;  %v270_v30 = vstv %s421_s27  ;;  %v275_v41 = vld [vmem:[#allocation2] sm:$0x1] }
  0x58   : > { %v266_v29 = vshrl.u32 %v265_v28, 7  ;;  %v268_v31 = vand.u32 127, %v265_v28 }
  0x5a   : > { %v269_v32 = vmul.u32 128, %v266_v29 }
  0x5c   : > { %v271_v33 = vadd.s32 %v270_v30, %v269_v32 }
  0x5e   : > { %v272_v34 = vadd.s32 %v271_v33, %v268_v31 }
  0x60   : > { %vm273_vm1 = vcmp.lt.s32.totalorder %v272_v34, 2048 }
  0x61   : > { %v274_v35 = vsel %vm273_vm1, %v244_v19, 0.0 }
  0x62   : > { %v276_v36 = vrot.slane %v274_v35, 4 }
  0x64   : > { %v277_v37 = vadd.f32 %v276_v36, %v274_v35 }
  0x66   : > { %v278_v38 = vrot.slane %v277_v37, 2 }
  0x68   : > { %v279_v39 = vadd.f32 %v278_v38, %v277_v37 }
  0x6a   : > { %v280_v40 = vrot.slane %v279_v39, 1 }
  0x6c   : > { %v281_v42 = vadd.f32 %v280_v40, %v279_v39 }
  0x6e   : > { %v282_v43 = vadd.f32 %v281_v42, %v275_v41 }
  0x70   : > { %283 = vst [vmem:[#allocation2] sm:$0x1] %v282_v43 }
  0x71 PF: > { %287 = vst [vmem:[%s764_s21] sm:$0xff] %v648_v0  ;;  %s425_s5 = sshll.u32 %s638_s12, 3  ;;  %s303_s15 = sshll.u32 %s764_s21, 4  ;;  %s304_s15 = int_to_ptr.vmem [resolvable:$true] %s303_s15 }
  0x72   : > { %s301_s8 = scalar_lea.hbm %s813_s2, %s425_s5  ;;  %s291_s18 = scalar_lea.sflag [#allocation5], %s741_s19 }
  0x73   : > { %s305_s16 = sshll.u32 %s301_s8, 4  ;;  %s580_s12 = scalar_lea.hbm %s813_s2, 16  ;;  %s306_s16 = int_to_ptr.hbm [resolvable:$true] %s305_s16 }
  0x74   : > { %s574_s20 = sshra.s32 %s306_s16, 4  ;;  %s575_s20 = int_to_ptr.hbm [resolvable:$true] %s574_s20 }
  0x75   : > { %s576_s28 = scalar_lea.hbm %s575_s20, 8  ;;  %p581_p10 = scmp.lt.s32.totalorder %s575_s20, %s813_s2 }
  0x76   : > { %p577_p6 = scmp.ne.s32.totalorder %s575_s20, %s576_s28  ;;  %p582_p13 = scmp.lt.s32.totalorder %s580_s12, %s576_s28 }
  0x77   : > { %v288_v44 = vld [vmem:[#allocation2] sm:$0x1] }
  0x78   : > { %289 = vst [vmem:[%s764_s21] sm:$0x1] %v288_v44  ;;  %p578_p7 = pnand %p577_p6, %p715_p9  ;;  %p583_p0 = por %p582_p13, %p581_p10 }
  0x7a   : > { %p579_p8 = pneg %p578_p7 }
  0x7c   : > { %p584_p1 = pnand %p583_p0, %p579_p8 }
  0x7e   : > { %587 = shalt.err (!%p584_p1)
}
  0x7f   : > { %432 = dma.vmem_to_hbm [thread:$0]  (%p715_p9), %s304_s15, 128, %s306_s16, %s291_s18  }
  0x80 PF: > { %s317_s19 = sand.u32 1, %s626_s9   ;;  %p442_p2 = pnand %p412_p12, %p722_p11 }
  0x81   : > { %s318_s26 = scalar_lea.sflag [#allocation5], %s317_s19 }
  0x82   : > { %p443_p3 = pneg %p442_p2 }
  0x84   : > { %621 = dma.done.wait (%p443_p3), %s318_s26, 128  }
  0x85   : > { %623 = vsyncadd (%p443_p3), %s318_s26, 4294967168  ;;  %s21_s14 = sadd.s32 1, %s646_s14   ;;  %s818_s9 = smov %s630_s10 }
  0x86   : > { %p18_p4 = scmp.ge.s32.totalorder %s21_s14, 4   ;;  %s819_s10 = smov %s634_s11 }
  0x87   : > { %s820_s11 = smov %s720_s23  ;;  %s821_s12 = smov %s642_s13 }
  0x88   : > { %s822_s13 = smov %s824_s17  ;;  %20 = sbr.rel (!%p18_p4) target bundleno = 8 (0x8), region = 102 }
  0x8d   :  { %324 = vsyncpa [#allocation4], 1 }
  0x8e   :  { %326 = vsyncpa [#allocation4 + $0x1], 1 }
  0x8f   :  { %327 = vsyncpa [#allocation7], 1 }
  0x90   :  { %329 = vsyncpa [#allocation7 + $0x1], 1 }
  0x91   :  { %330 = vsyncpa [#allocation5], 1 }
  0x92   :  { %332 = vsyncpa [#allocation5 + $0x1], 1 }

</bundles_post_ra>
